<compile_context>
chip_gen: v7x
topology: tpu7x:2x2x1
jax: 0.10.0
libtpu: 0.0.40
codegen_flags: <defaults>
</compile_context>

<pallas_src>
import jax
import jax.numpy as jnp
from jax.experimental import pallas as pl
from jax.experimental.pallas import tpu as pltpu


def _round_up(x, m):
    return ((x + m - 1) // m) * m


def _pad_cast(a, shape, dtype):
    """Cast + zero-pad `a` to `shape`; both are no-ops when already aligned,
    so no per-call HBM copy is issued for well-shaped FPN weights."""
    a = a.astype(dtype)                      # no-op if dtype already matches
    if tuple(a.shape) == tuple(shape):
        return a
    return jnp.pad(a, [(0, t - s) for s, t in zip(a.shape, shape)])


def _two_mlp_head_kernel(x_ref, w6_ref, b6_ref, w7_ref, b7_ref, o_ref, acc_ref):
    k = pl.program_id(1)

    @pl.when(k == 0)
    def _():
        acc_ref[...] = jnp.zeros_like(acc_ref)

    # Pure MXU accumulate over the K (in_size) tiles; f32 accumulation.
    acc_ref[...] += jnp.dot(
        x_ref[...], w6_ref[...], preferred_element_type=jnp.float32
    )

    @pl.when(k == pl.num_programs(1) - 1)
    def _():
        # fc6 epilogue in place on the accumulator (no extra (tm, rep) f32
        # temp), then fc7 + bias + ReLU and a single lane-dense store.
        acc_ref[...] = jnp.maximum(acc_ref[...] + b6_ref[...], 0.0)
        y = jnp.dot(
            acc_ref[...].astype(w7_ref.dtype), w7_ref[...],
            preferred_element_type=jnp.float32,
        )
        o_ref[...] = jnp.maximum(y + b7_ref[...], 0.0).astype(o_ref.dtype)


def _vmem_bytes(tm, tk, rep_p, c_itm, o_itm, w7_bufs):
    return (2 * tm * tk * c_itm                 # x tiles (double-buffered)
            + 2 * tk * rep_p * c_itm            # w6 tiles (double-buffered)
            + w7_bufs * rep_p * rep_p * c_itm   # resident w7
            + 2 * w7_bufs * rep_p * 4           # resident biases (f32)
            + 2 * tm * rep_p * o_itm            # output tiles (double-buffered)
            + tm * rep_p * 4)                   # f32 accumulator scratch


def two_mlp_head(x_flat, w6, b6, w7, b7, *, compute_dtype=None,
                 tm=None, tk=None):
    """x_flat: [N, in_size]; w6: [in_size, rep]; b6: [1, rep] or [rep];
    w7: [rep, rep]; b7: [1, rep] or [rep]  ->  [N, rep] (dtype of x_flat).

    NOTE: at real FPN-head sizes (in_size=12544, rep=1024) this kernel is
    weight-bandwidth bound.  On v6e/v7x pass compute_dtype=jnp.bfloat16
    (accumulation stays f32) and pre-cast the weights once outside the
    per-step path to roughly halve HBM traffic."""
    n, in_size = x_flat.shape
    rep = w6.shape[1]
    out_dtype = x_flat.dtype
    if compute_dtype is None:
        compute_dtype = x_flat.dtype
    compute_dtype = jnp.dtype(compute_dtype)
    c_itm = compute_dtype.itemsize
    o_itm = jnp.dtype(out_dtype).itemsize

    # ---- generation-aware VMEM budget --------------------------------------
    try:
        vmem_cap = pltpu.get_tpu_info().vmem_capacity_bytes
    except Exception:
        vmem_cap = 128 * 1024 * 1024
    if vmem_cap >= 100 * 1024 * 1024:            # v5e / v6e: 128 MiB physical
        vmem_budget = 100 * 1024 * 1024
    else:                                         # v7x: 64 MiB per TensorCore
        vmem_budget = max(vmem_cap - 12 * 1024 * 1024, 32 * 1024 * 1024)

    rep_p = _round_up(rep, 128)                   # lane-dense output width
    w7_bufs = 1 if rep_p >= 512 else 2            # single-buffer big residents

    # ---- batch tile: large so w6 is re-streamed rarely; keep >= 2 batch
    #      tiles when n allows so the "parallel" axis spans both v7x cores ---
    if tm is None:
        if n >= 1024:
            tm = 512
        elif n >= 512:
            tm = 256
        elif n >= 128:
            tm = 128
        else:
            tm = _round_up(max(n, 8), 8)
    else:
        tm = _round_up(tm, 8)
    n_p = _round_up(n, tm)

    # ---- K tile: largest divisor of the 128-rounded in_size that is <= 2048
    #      so no K padding / all-zero K tiles are introduced ------------------
    k128 = _round_up(in_size, 128)
    units = k128 // 128
    div_tks = sorted(d * 128 for d in range(1, units + 1) if units % d == 0)
    if tk is None:
        cand = [t for t in div_tks if t <= 2048]
        tk = cand[-1] if cand else 128
    else:
        tk = _round_up(tk, 128)
    k_p = _round_up(in_size, tk)

    # ---- shrink tiles until the estimate (plus headroom) fits the budget ----
    while _vmem_bytes(tm, tk, rep_p, c_itm, o_itm, w7_bufs) * 3 // 2 > vmem_budget:
        smaller_tk = [t for t in div_tks if t < tk]
        if smaller_tk:
            tk = smaller_tk[-1]
            k_p = _round_up(in_size, tk)
        elif tm > 128:
            tm = _round_up(tm // 2, 8)
            n_p = _round_up(n, tm)
        else:
            break

    # ---- pad + cast (skipped entirely when already aligned, e.g. the real
    #      FPN sizes 12544 / 1024 with pre-cast weights) ----------------------
    x_p = _pad_cast(x_flat, (n_p, k_p), compute_dtype)
    w6_p = _pad_cast(w6, (k_p, rep_p), compute_dtype)
    w7_p = _pad_cast(w7, (rep_p, rep_p), compute_dtype)
    b6_p = _pad_cast(jnp.reshape(b6, (1, rep)), (1, rep_p), jnp.float32)
    b7_p = _pad_cast(jnp.reshape(b7, (1, rep)), (1, rep_p), jnp.float32)

    grid = (n_p // tm, k_p // tk)
    n_bt = grid[0]

    vmem_est = _vmem_bytes(tm, tk, rep_p, c_itm, o_itm, w7_bufs)
    vmem_limit = int(min(max(vmem_est * 3 // 2, 16 * 1024 * 1024), vmem_budget))

    # Honest byte count: w6 is re-read once per batch tile under this grid.
    cost = pl.CostEstimate(
        flops=2 * n_p * k_p * rep_p + 2 * n_p * rep_p * rep_p,
        transcendentals=0,
        bytes_accessed=(n_p * k_p * c_itm
                        + n_bt * k_p * rep_p * c_itm
                        + rep_p * rep_p * c_itm
                        + 2 * rep_p * 4
                        + n_p * rep_p * o_itm),
    )

    # Resident operands (constant index maps).  At real FPN sizes they are
    # single-buffered so the saved VMEM buys larger tm/tk on v7x's 64 MiB.
    if w7_bufs == 1:
        b6_spec = pl.BlockSpec((1, rep_p), lambda i, k: (0, 0),
                               pipeline_mode=pl.Buffered(1))
        w7_spec = pl.BlockSpec((rep_p, rep_p), lambda i, k: (0, 0),
                               pipeline_mode=pl.Buffered(1))
        b7_spec = pl.BlockSpec((1, rep_p), lambda i, k: (0, 0),
                               pipeline_mode=pl.Buffered(1))
    else:
        b6_spec = pl.BlockSpec((1, rep_p), lambda i, k: (0, 0))
        w7_spec = pl.BlockSpec((rep_p, rep_p), lambda i, k: (0, 0))
        b7_spec = pl.BlockSpec((1, rep_p), lambda i, k: (0, 0))

    out_p = pl.pallas_call(
        _two_mlp_head_kernel,
        out_shape=jax.ShapeDtypeStruct((n_p, rep_p), out_dtype),
        grid_spec=pltpu.PrefetchScalarGridSpec(
            num_scalar_prefetch=0,
            grid=grid,
            in_specs=[
                pl.BlockSpec((tm, tk), lambda i, k: (i, k)),       # x tile
                pl.BlockSpec((tk, rep_p), lambda i, k: (k, 0)),    # w6 tile
                b6_spec,                                           # b6 resident
                w7_spec,                                           # w7 resident
                b7_spec,                                           # b7 resident
            ],
            out_specs=pl.BlockSpec((tm, rep_p), lambda i, k: (i, 0)),
            scratch_shapes=[pltpu.VMEM((tm, rep_p), jnp.float32)],
        ),
        compiler_params=pltpu.CompilerParams(
            dimension_semantics=("parallel", "arbitrary"),
            vmem_limit_bytes=vmem_limit,
        ),
        cost_estimate=cost,
    )(x_p, w6_p, b6_p, w7_p, b7_p)

    if (n_p, rep_p) != (n, rep):
        out_p = out_p[:n, :rep]
    return out_p


def two_mlp_head_forward(x_nchw, params, *, compute_dtype=None):
    # flatten(start_dim=1): NCHW row-major flatten, same as torch.
    n = x_nchw.shape[0]
    x_flat = x_nchw.reshape(n, -1)
    return two_mlp_head(x_flat, params["w6"], params["b6"],
                        params["w7"], params["b7"],
                        compute_dtype=compute_dtype)


def init_params(key, in_size, representation_size, dtype=jnp.float32):
    k1, k2, k3, k4 = jax.random.split(key, 4)
    # Deterministic synthetic init (uniform, PyTorch-Linear-like scale).
    s6 = 1.0 / jnp.sqrt(in_size)
    s7 = 1.0 / jnp.sqrt(representation_size)
    return {
        "w6": jax.random.uniform(k1, (in_size, representation_size),
                                 dtype, -s6, s6),
        "b6": jax.random.uniform(k2, (1, representation_size), dtype, -s6, s6),
        "w7": jax.random.uniform(k3, (representation_size, representation_size),
                                 dtype, -s7, s7),
        "b7": jax.random.uniform(k4, (1, representation_size), dtype, -s7, s7),
    }


if __name__ == "__main__":
    key = jax.random.PRNGKey(0)
    kx, kp = jax.random.split(key)

    # Small shapes consistent with the module: x [N, C, H, W] flattened to
    # [N, C*H*W]; representation_size = 32.
    N, C, H, W = 2, 4, 16, 16
    in_size = C * H * W
    rep = 32

    x = jax.random.normal(kx, (N, C, H, W), dtype=jnp.float32)
    params = init_params(kp, in_size, rep)

    # Pure-JAX reference.
    x_flat = x.reshape(N, -1)
    ref = jnp.maximum(x_flat @ params["w6"] + params["b6"], 0.0)
    ref = jnp.maximum(ref @ params["w7"] + params["b7"], 0.0)

    # f32 path (exact semantics of the PyTorch module).
    out = two_mlp_head_forward(x, params)
    out = jax.block_until_ready(out)
    assert out.shape == (N, rep)
    assert jnp.allclose(out, ref, atol=1e-4, rtol=1e-4)

    # bf16 weight/activation path (f32 accumulation) — the bandwidth-saving
    # configuration recommended for real FPN-head sizes; loose sanity check.
    out_bf16 = two_mlp_head_forward(x, params, compute_dtype=jnp.bfloat16)
    out_bf16 = jax.block_until_ready(out_bf16)
    assert out_bf16.shape == (N, rep)
    assert bool(jnp.all(jnp.isfinite(out_bf16)))
    assert float(jnp.max(jnp.abs(out_bf16.astype(jnp.float32) - ref))) < 0.25

    print("KERNEL_OK")
</pallas_src>

<mosaic_0001>
module attributes {stable_mosaic.version = 11 : i64} {
  func.func @_two_mlp_head_kernel(%arg0: i32, %arg1: i32, %arg2: memref<8x1024xf32, #tpu.memory_space<vmem>>, %arg3: memref<1024x128xf32, #tpu.memory_space<vmem>>, %arg4: memref<1x128xf32, #tpu.memory_space<vmem>>, %arg5: memref<128x128xf32, #tpu.memory_space<vmem>>, %arg6: memref<1x128xf32, #tpu.memory_space<vmem>>, %arg7: memref<8x128xf32, #tpu.memory_space<vmem>>, %arg8: memref<8x128xf32, #tpu.memory_space<vmem>>) attributes {dimension_semantics = [#tpu.dimension_semantics<parallel>, #tpu.dimension_semantics<arbitrary>], iteration_bounds = array<i64: 1, 1>, scalar_prefetch = 0 : i64, scratch_operands = 1 : i64, tpu.core_type = #tpu.core_type<tc>, window_params = [{transform_indices = @transform_0, window_bounds = array<i64: 8, 1024>}, {transform_indices = @transform_1, window_bounds = array<i64: 1024, 128>}, {pipeline_mode = #tpu.pipeline_mode<synchronous>, transform_indices = @transform_2, window_bounds = array<i64: 1, 128>}, {pipeline_mode = #tpu.pipeline_mode<synchronous>, transform_indices = @transform_3, window_bounds = array<i64: 128, 128>}, {pipeline_mode = #tpu.pipeline_mode<synchronous>, transform_indices = @transform_4, window_bounds = array<i64: 1, 128>}, {transform_indices = @transform_5, window_bounds = array<i64: 8, 128>}]} {
    %c0_i32 = arith.constant 0 : i32
    %0 = arith.cmpi eq, %arg1, %c0_i32 : i32
    %1 = arith.extui %0 : i1 to i32
    %c0_i32_0 = arith.constant 0 : i32
    %2 = arith.cmpi ne, %1, %c0_i32_0 : i32
    scf.if %2 {
      %cst_10 = arith.constant 0.000000e+00 : f32
      %12 = vector.broadcast %cst_10 : f32 to vector<8x128xf32>
      %c0_11 = arith.constant 0 : index
      %c0_12 = arith.constant 0 : index
      %13 = vector.load %arg8[%c0_11, %c0_12] : memref<8x128xf32, #tpu.memory_space<vmem>>, vector<8x128xf32>
      tpu.vector_store %arg8[%c0_11, %c0_12], %12 {strides = array<i32>} : memref<8x128xf32, #tpu.memory_space<vmem>>, vector<8x128xf32>,
    } else {
    }
    %c0 = arith.constant 0 : index
    %c0_1 = arith.constant 0 : index
    %3 = vector.load %arg8[%c0, %c0_1] : memref<8x128xf32, #tpu.memory_space<vmem>>, vector<8x128xf32>
    %c0_2 = arith.constant 0 : index
    %c0_3 = arith.constant 0 : index
    %4 = vector.load %arg2[%c0_2, %c0_3] : memref<8x1024xf32, #tpu.memory_space<vmem>>, vector<8x1024xf32>
    %c0_4 = arith.constant 0 : index
    %c0_5 = arith.constant 0 : index
    %5 = vector.load %arg3[%c0_4, %c0_5] : memref<1024x128xf32, #tpu.memory_space<vmem>>, vector<1024x128xf32>
    %cst = arith.constant dense<0.000000e+00> : vector<8x128xf32>
    %6 = tpu.matmul %4, %5, %cst {dimension_numbers = #tpu.dot_dimension_numbers<[1], [0], [0], [1], [0, 0, 1, 1], [], []>} : vector<8x1024xf32>, vector<1024x128xf32>, vector<8x128xf32> -> vector<8x128xf32>
    %7 = arith.addf %3, %6 : vector<8x128xf32>
    %c0_6 = arith.constant 0 : index
    %c0_7 = arith.constant 0 : index
    %8 = vector.load %arg8[%c0_6, %c0_7] : memref<8x128xf32, #tpu.memory_space<vmem>>, vector<8x128xf32>
    tpu.vector_store %arg8[%c0_6, %c0_7], %7 {strides = array<i32>} : memref<8x128xf32, #tpu.memory_space<vmem>>, vector<8x128xf32>,
    %c0_i32_8 = arith.constant 0 : i32
    %9 = arith.cmpi eq, %arg1, %c0_i32_8 : i32
    %10 = arith.extui %9 : i1 to i32
    %c0_i32_9 = arith.constant 0 : i32
    %11 = arith.cmpi ne, %10, %c0_i32_9 : i32
    scf.if %11 {
      %c0_10 = arith.constant 0 : index
      %c0_11 = arith.constant 0 : index
      %12 = vector.load %arg8[%c0_10, %c0_11] : memref<8x128xf32, #tpu.memory_space<vmem>>, vector<8x128xf32>
      %c0_12 = arith.constant 0 : index
      %c0_13 = arith.constant 0 : index
      %13 = vector.load %arg4[%c0_12, %c0_13] : memref<1x128xf32, #tpu.memory_space<vmem>>, vector<1x128xf32>
      %14 = vector.broadcast %13 : vector<1x128xf32> to vector<8x128xf32>
      %15 = arith.addf %12, %14 : vector<8x128xf32>
      %cst_14 = arith.constant 0.000000e+00 : f32
      %16 = vector.broadcast %cst_14 : f32 to vector<8x128xf32>
      %17 = arith.maximumf %15, %16 : vector<8x128xf32>
      %c0_15 = arith.constant 0 : index
      %c0_16 = arith.constant 0 : index
      %18 = vector.load %arg8[%c0_15, %c0_16] : memref<8x128xf32, #tpu.memory_space<vmem>>, vector<8x128xf32>
      tpu.vector_store %arg8[%c0_15, %c0_16], %17 {strides = array<i32>} : memref<8x128xf32, #tpu.memory_space<vmem>>, vector<8x128xf32>,
      %c0_17 = arith.constant 0 : index
      %c0_18 = arith.constant 0 : index
      %19 = vector.load %arg8[%c0_17, %c0_18] : memref<8x128xf32, #tpu.memory_space<vmem>>, vector<8x128xf32>
      %c0_19 = arith.constant 0 : index
      %c0_20 = arith.constant 0 : index
      %20 = vector.load %arg5[%c0_19, %c0_20] : memref<128x128xf32, #tpu.memory_space<vmem>>, vector<128x128xf32>
      %cst_21 = arith.constant dense<0.000000e+00> : vector<8x128xf32>
      %21 = tpu.matmul %19, %20, %cst_21 {dimension_numbers = #tpu.dot_dimension_numbers<[1], [0], [0], [1], [0, 0, 1, 1], [], []>} : vector<8x128xf32>, vector<128x128xf32>, vector<8x128xf32> -> vector<8x128xf32>
      %c0_22 = arith.constant 0 : index
      %c0_23 = arith.constant 0 : index
      %22 = vector.load %arg6[%c0_22, %c0_23] : memref<1x128xf32, #tpu.memory_space<vmem>>, vector<1x128xf32>
      %23 = vector.broadcast %22 : vector<1x128xf32> to vector<8x128xf32>
      %24 = arith.addf %21, %23 : vector<8x128xf32>
      %cst_24 = arith.constant 0.000000e+00 : f32
      %25 = vector.broadcast %cst_24 : f32 to vector<8x128xf32>
      %26 = arith.maximumf %24, %25 : vector<8x128xf32>
      %c0_25 = arith.constant 0 : index
      %c0_26 = arith.constant 0 : index
      %27 = vector.load %arg7[%c0_25, %c0_26] : memref<8x128xf32, #tpu.memory_space<vmem>>, vector<8x128xf32>
      tpu.vector_store %arg7[%c0_25, %c0_26], %26 {strides = array<i32>} : memref<8x128xf32, #tpu.memory_space<vmem>>, vector<8x128xf32>,
    } else {
    }
    return
  }
  func.func @transform_0(%arg0: i32, %arg1: i32) -> (i32, i32) {
    %c0_i32 = arith.constant 0 : i32
    return %arg0, %arg1 : i32, i32
  }
  func.func @transform_1(%arg0: i32, %arg1: i32) -> (i32, i32) {
    %c0_i32 = arith.constant 0 : i32
    %c0_i32_0 = arith.constant 0 : i32
    return %arg1, %c0_i32 : i32, i32
  }
  func.func @transform_2(%arg0: i32, %arg1: i32) -> (i32, i32) {
    %c0_i32 = arith.constant 0 : i32
    %c0_i32_0 = arith.constant 0 : i32
    %c0_i32_1 = arith.constant 0 : i32
    return %c0_i32, %c0_i32_0 : i32, i32
  }
  func.func @transform_3(%arg0: i32, %arg1: i32) -> (i32, i32) {
    %c0_i32 = arith.constant 0 : i32
    %c0_i32_0 = arith.constant 0 : i32
    %c0_i32_1 = arith.constant 0 : i32
    return %c0_i32, %c0_i32_0 : i32, i32
  }
  func.func @transform_4(%arg0: i32, %arg1: i32) -> (i32, i32) {
    %c0_i32 = arith.constant 0 : i32
    %c0_i32_0 = arith.constant 0 : i32
    %c0_i32_1 = arith.constant 0 : i32
    return %c0_i32, %c0_i32_0 : i32, i32
  }
  func.func @transform_5(%arg0: i32, %arg1: i32) -> (i32, i32) {
    %c0_i32 = arith.constant 0 : i32
    %c0_i32_0 = arith.constant 0 : i32
    return %arg0, %c0_i32 : i32, i32
  }
}

</mosaic_0001>

<bundles_post_ra>
// kernel: tpu_custom_call.1
= control target key start
LH: loop header
LB: loop body
LE: loop exit
PB: predicated region body
PF: predicated region fallthrough
CT: control target
= control target key end

     0   :  { %10 = vsyncpa [#allocation4], 0  ;;  %s1158_s0 = inlined_call_operand.hbm [shape: f32[8,1024], index: 0, kind: input, shape index: {}]   ;;  %s1159_s1 = inlined_call_operand.hbm [shape: f32[1024,128], index: 1, kind: input, shape index: {}]   ;;  %s1160_s2 = inlined_call_operand.vmem [shape: f32[1,128], index: 2, kind: input, shape index: {}]   ;;  %s1161_s3 = inlined_call_operand.hbm [shape: f32[128,128], index: 3, kind: input, shape index: {}]   ;;  %s1162_s4 = inlined_call_operand.vmem [shape: f32[1,128], index: 4, kind: input, shape index: {}]   ;;  %s1163_s5 = inlined_call_operand.hbm [shape: f32[8,128], index: 5, kind: output, shape index: {}]  }
   0x1   :  { %11 = vsyncpa [#allocation7], 0 }
   0x2   :  { %12 = vsyncpa [#allocation5], 0  ;;  %s1059_s18 = smov [#allocation6]   ;;  %s965_s22 = scalar_lea.hbm %s1159_s1, 16384 }
   0x3   :  { %s28_s19 = sshll.u32 %s1059_s18, 4  ;;  %p966_p0 = scmp.ne.s32.totalorder %s1159_s1, %s965_s22  ;;  %s29_s19 = int_to_ptr.vmem [resolvable:$true] %s28_s19 }
   0x4   :  { %p969_p1 = scmp.lt.u32.totalorder %s965_s22, %s1159_s1 }
   0x6   :  { %p971_p2 = pnand %p969_p1, %p966_p0 }
   0x8   :  { %974 = shalt.err (!%p971_p2)
}
   0x9   :  { %s975_s27 = scalar_lea.vmem %s29_s19, 16384  ;;  %p980_p4 = scmp.lt.s32.totalorder %s29_s19, %s29_s19 }
   0xa   :  { %p976_p3 = scmp.ne.s32.totalorder %s29_s19, %s975_s27  ;;  %p981_p5 = scmp.lt.s32.totalorder %s975_s27, %s975_s27 }
   0xc   :  { %p982_p6 = por %p981_p5, %p980_p4 }
   0xe   :  { %p983_p7 = pnand %p982_p6, %p976_p3 }
  0x10   :  { %986 = shalt.err (!%p983_p7)
}
  0x11   :  { %s1060_s28 = smov 128   ;;  %s1061_s29 = smov 8  }
  0x12   :  { %34 = dma.hbm_to_vmem [thread:$0]  %s1159_s1, 16384, %s29_s19, [#allocation7], %s1060_s28, %s1060_s28, %s1061_s29  }
  0x13   :  { %s1062_s7 = smov [#allocation3]   ;;  %s1063_s9 = smov [#allocation8]  }
  0x14   :  { %s19_s8 = sshll.u32 %s1062_s7, 4  ;;  %s42_s10 = sshll.u32 %s1063_s9, 4  ;;  %s20_s8 = int_to_ptr.vmem [resolvable:$true] %s19_s8  ;;  %s43_s10 = int_to_ptr.vmem [resolvable:$true] %s42_s10 }
  0x15   :  { %s987_s13 = scalar_lea.hbm %s1158_s0, 1024 }
  0x16   :  { %p988_p8 = scmp.ne.s32.totalorder %s1158_s0, %s987_s13  ;;  %p991_p9 = scmp.lt.u32.totalorder %s987_s13, %s1158_s0 }
  0x18   :  { %p993_p10 = pnand %p991_p9, %p988_p8 }
  0x1a   :  { %996 = shalt.err (!%p993_p10)
}
  0x1b   :  { %s997_s1 = scalar_lea.vmem %s20_s8, 1024  ;;  %p1002_p12 = scmp.lt.s32.totalorder %s20_s8, %s20_s8 }
  0x1c   :  { %p998_p11 = scmp.ne.s32.totalorder %s20_s8, %s997_s1  ;;  %p1003_p13 = scmp.lt.s32.totalorder %s997_s1, %s997_s1 }
  0x1e   :  { %p1004_p0 = por %p1003_p13, %p1002_p12 }
  0x20   :  { %p1005_p1 = pnand %p1004_p0, %p998_p11 }
  0x22   :  { %1008 = shalt.err (!%p1005_p1)
}
  0x23   :  { %22 = dma.hbm_to_vmem [thread:$0]  %s1158_s0, 1024, %s20_s8, [#allocation4]  }
  0x24   :  { %s1009_s22 = scalar_lea.hbm %s1161_s3, 2048 }
  0x25   :  { %p1010_p2 = scmp.ne.s32.totalorder %s1161_s3, %s1009_s22  ;;  %p1013_p3 = scmp.lt.u32.totalorder %s1009_s22, %s1161_s3 }
  0x27   :  { %p1015_p4 = pnand %p1013_p3, %p1010_p2 }
  0x29   :  { %1018 = shalt.err (!%p1015_p4)
}
  0x2a   :  { %s1019_s27 = scalar_lea.vmem %s43_s10, 2048  ;;  %p1024_p6 = scmp.lt.s32.totalorder %s43_s10, %s43_s10 }
  0x2b   :  { %p1020_p5 = scmp.ne.s32.totalorder %s43_s10, %s1019_s27  ;;  %p1025_p7 = scmp.lt.s32.totalorder %s1019_s27, %s1019_s27 }
  0x2d   :  { %p1026_p8 = por %p1025_p7, %p1024_p6 }
  0x2f   :  { %p1027_p9 = pnand %p1026_p8, %p1020_p5 }
  0x31   :  { %1030 = shalt.err (!%p1027_p9)
}
  0x32   :  { %48 = dma.hbm_to_vmem [thread:$0]  %s1161_s3, 2048, %s43_s10, [#allocation7], %s1060_s28, %s1060_s28, %s1061_s29  }
  0x33   :  { %1053 = dma.done.wait [#allocation4], 1024  }
  0x34   :  { %1054 = vsyncadd [#allocation4], 4294966272 }
  0x35   :  { %1055 = dma.done.wait [#allocation7], 18432  }
  0x36   :  { %1056 = vsyncadd [#allocation7], 4294948864  ;;  %v90_v0 = vld [vmem:[#allocation6 + $0x80] sm:$0xff]  ;;  %v91_v1 = vld [vmem:[#allocation6 + $0x88] sm:$0xff]  ;;  %vm1065_vm0 = vmmov 0   ;;  %s1067_s7 = smov [#allocation9]  }
  0x37   :  { %v122_v2 = vld [vmem:[#allocation6 + $0x180] sm:$0xff]  ;;  %v804_v3 = vpack.c.bf16 %v91_v1, %v90_v0  ;;  %v123_v4 = vld [vmem:[#allocation6 + $0x188] sm:$0xff]  ;;  %v92_v11 = vld [vmem:[#allocation6 + $0x90] sm:$0xff]  ;;  %s600_s8 = sshll.u32 %s1067_s7, 4  ;;  %s601_s8 = int_to_ptr.vmem [resolvable:$true] %s600_s8 }
  0x38   :  { %v74_v5 = vld [vmem:[#allocation6] sm:$0xff]  ;;  %v75_v6 = vld [vmem:[#allocation6 + $0x8] sm:$0xff]  ;;  %v836_v7 = vpack.c.bf16 %v123_v4, %v122_v2  ;;  %v93_v13 = vld [vmem:[#allocation6 + $0x98] sm:$0xff]  ;;  %s1031_s9 = scalar_lea.vmem %s601_s8, 128  ;;  %p1036_p11 = scmp.lt.s32.totalorder %s601_s8, %s601_s8 }
  0x39   :  { %v806_v8 = vpack.c.bf16 %v75_v6, %v74_v5  ;;  %v106_v9 = vld [vmem:[#allocation6 + $0x100] sm:$0xff]  ;;  %v107_v10 = vld [vmem:[#allocation6 + $0x108] sm:$0xff]  ;;  %805 = vmatprep.subr.bf16.mxu0 %v804_v3  ;;  %v124_v14 = vld [vmem:[#allocation6 + $0x190] sm:$0xff]  ;;  %v808_v16 = vpack.c.bf16 %v93_v13, %v92_v11  ;;  %p1032_p10 = scmp.ne.s32.totalorder %s601_s8, %s1031_s9  ;;  %p1037_p12 = scmp.lt.s32.totalorder %s1031_s9, %s1031_s9 }
  0x3a   :  { %v838_v12 = vpack.c.bf16 %v107_v10, %v106_v9  ;;  %v125_v15 = vld [vmem:[#allocation6 + $0x198] sm:$0xff]  ;;  %837 = vmatprep.subr.bf16.mxu1 %v836_v7  ;;  %v76_v18 = vld [vmem:[#allocation6 + $0x10] sm:$0xff]  ;;  %v94_v23 = vld [vmem:[#allocation6 + $0xa0] sm:$0xff] }
  0x3b   :  { %807 = vmatpush3.bf16.msra.mxu0 %v806_v8  ;;  %v840_v17 = vpack.c.bf16 %v125_v15, %v124_v14  ;;  %v77_v19 = vld [vmem:[#allocation6 + $0x18] sm:$0xff]  ;;  %v108_v20 = vld [vmem:[#allocation6 + $0x110] sm:$0xff]  ;;  %v95_v24 = vld [vmem:[#allocation6 + $0xa8] sm:$0xff]  ;;  %p1038_p13 = por %p1037_p12, %p1036_p11 }
  0x3c   :  { %839 = vmatpush3.bf16.msra.mxu1 %v838_v12  ;;  %v810_v21 = vpack.c.bf16 %v77_v19, %v76_v18  ;;  %v109_v22 = vld [vmem:[#allocation6 + $0x118] sm:$0xff]  ;;  %809 = vmatprep.subr.bf16.mxu0 %v808_v16  ;;  %v812_v26 = vpack.c.bf16 %v95_v24, %v94_v23  ;;  %v126_v27 = vld [vmem:[#allocation6 + $0x1a0] sm:$0xff]  ;;  %v127_v28 = vld [vmem:[#allocation6 + $0x1a8] sm:$0xff] }
  0x3d   :  { %841 = vmatprep.subr.bf16.mxu1 %v840_v17  ;;  %v842_v25 = vpack.c.bf16 %v109_v22, %v108_v20  ;;  %v78_v29 = vld [vmem:[#allocation6 + $0x20] sm:$0xff]  ;;  %v844_v30 = vpack.c.bf16 %v127_v28, %v126_v27  ;;  %v79_v31 = vld [vmem:[#allocation6 + $0x28] sm:$0xff]  ;;  %v96_v35 = vld [vmem:[#allocation6 + $0xb0] sm:$0xff]  ;;  %p1039_p0 = pnand %p1038_p13, %p1032_p10 }
  0x3e   :  { %v110_v32 = vld [vmem:[#allocation6 + $0x120] sm:$0xff]  ;;  %v111_v33 = vld [vmem:[#allocation6 + $0x128] sm:$0xff]  ;;  %v814_v34 = vpack.c.bf16 %v79_v31, %v78_v29  ;;  %v97_v36 = vld [vmem:[#allocation6 + $0xb8] sm:$0xff] }
  0x3f   :  { %811 = vmatpush3.bf16.msra.mxu0 %v810_v21  ;;  %v128_v37 = vld [vmem:[#allocation6 + $0x1b0] sm:$0xff]  ;;  %v846_v38 = vpack.c.bf16 %v111_v33, %v110_v32  ;;  %v816_v39 = vpack.c.bf16 %v97_v36, %v96_v35  ;;  %v129_v40 = vld [vmem:[#allocation6 + $0x1b8] sm:$0xff]  ;;  %v98_v46 = vld [vmem:[#allocation6 + $0xc0] sm:$0xff] }
  0x40   :  { %843 = vmatpush3.bf16.msra.mxu1 %v842_v25  ;;  %813 = vmatprep.subr.bf16.mxu0 %v812_v26  ;;  %v80_v41 = vld [vmem:[#allocation6 + $0x30] sm:$0xff]  ;;  %v81_v42 = vld [vmem:[#allocation6 + $0x38] sm:$0xff]  ;;  %v848_v43 = vpack.c.bf16 %v129_v40, %v128_v37  ;;  %v99_v47 = vld [vmem:[#allocation6 + $0xc8] sm:$0xff] }
  0x41   :  { %845 = vmatprep.subr.bf16.mxu1 %v844_v30  ;;  %v112_v44 = vld [vmem:[#allocation6 + $0x130] sm:$0xff]  ;;  %v113_v45 = vld [vmem:[#allocation6 + $0x138] sm:$0xff]  ;;  %v130_v48 = vld [vmem:[#allocation6 + $0x1c0] sm:$0xff]  ;;  %v818_v50 = vpack.c.bf16 %v81_v42, %v80_v41  ;;  %v820_v52 = vpack.c.bf16 %v99_v47, %v98_v46 }
  0x42   :  { %v131_v49 = vld [vmem:[#allocation6 + $0x1c8] sm:$0xff]  ;;  %v850_v51 = vpack.c.bf16 %v113_v45, %v112_v44  ;;  %v82_v53 = vld [vmem:[#allocation6 + $0x40] sm:$0xff]  ;;  %v100_v58 = vld [vmem:[#allocation6 + $0xd0] sm:$0xff] }
  0x43   :  { %815 = vmatpush3.bf16.msra.mxu0 %v814_v34  ;;  %v83_v54 = vld [vmem:[#allocation6 + $0x48] sm:$0xff]  ;;  %v114_v55 = vld [vmem:[#allocation6 + $0x140] sm:$0xff]  ;;  %v852_v56 = vpack.c.bf16 %v131_v49, %v130_v48  ;;  %v101_v59 = vld [vmem:[#allocation6 + $0xd8] sm:$0xff] }
  0x44   :  { %847 = vmatpush3.bf16.msra.mxu1 %v846_v38  ;;  %817 = vmatprep.subr.bf16.mxu0 %v816_v39  ;;  %v115_v57 = vld [vmem:[#allocation6 + $0x148] sm:$0xff]  ;;  %v132_v60 = vld [vmem:[#allocation6 + $0x1d0] sm:$0xff]  ;;  %v133_v61 = vld [vmem:[#allocation6 + $0x1d8] sm:$0xff]  ;;  %v822_v62 = vpack.c.bf16 %v83_v54, %v82_v53  ;;  %v824_v0 = vpack.c.bf16 %v101_v59, %v100_v58 }
  0x45   :  { %849 = vmatprep.subr.bf16.mxu1 %v848_v43  ;;  %v854_v63 = vpack.c.bf16 %v115_v57, %v114_v55  ;;  %v84_v1 = vld [vmem:[#allocation6 + $0x50] sm:$0xff]  ;;  %v85_v2 = vld [vmem:[#allocation6 + $0x58] sm:$0xff]  ;;  %v856_v4 = vpack.c.bf16 %v133_v61, %v132_v60  ;;  %v102_v6 = vld [vmem:[#allocation6 + $0xe0] sm:$0xff] }
  0x46   :  { %v116_v3 = vld [vmem:[#allocation6 + $0x150] sm:$0xff]  ;;  %v117_v5 = vld [vmem:[#allocation6 + $0x158] sm:$0xff]  ;;  %v103_v7 = vld [vmem:[#allocation6 + $0xe8] sm:$0xff]  ;;  %v826_v10 = vpack.c.bf16 %v85_v2, %v84_v1 }
  0x47   :  { %819 = vmatpush3.bf16.msra.mxu0 %v818_v50  ;;  %v134_v8 = vld [vmem:[#allocation6 + $0x1e0] sm:$0xff]  ;;  %v135_v9 = vld [vmem:[#allocation6 + $0x1e8] sm:$0xff]  ;;  %v858_v13 = vpack.c.bf16 %v117_v5, %v116_v3  ;;  %v828_v14 = vpack.c.bf16 %v103_v7, %v102_v6  ;;  %v69_v17 = vld [vmem:[#allocation3 + $0x18] sm:$0xff] }
  0x48   :  { %851 = vmatpush3.bf16.msra.mxu1 %v850_v51  ;;  %821 = vmatprep.subr.bf16.mxu0 %v820_v52  ;;  %v86_v11 = vld [vmem:[#allocation6 + $0x60] sm:$0xff]  ;;  %v87_v12 = vld [vmem:[#allocation6 + $0x68] sm:$0xff]  ;;  %v860_v18 = vpack.c.bf16 %v135_v9, %v134_v8  ;;  %v104_v20 = vld [vmem:[#allocation6 + $0xf0] sm:$0xff] }
  0x49   :  { %853 = vmatprep.subr.bf16.mxu1 %v852_v56  ;;  %v118_v15 = vld [vmem:[#allocation6 + $0x160] sm:$0xff]  ;;  %v67_v16 = vld [vmem:[#allocation3 + $0x8] sm:$0xff]  ;;  %v105_v21 = vld [vmem:[#allocation6 + $0xf8] sm:$0xff]  ;;  %336 = vmatprep.mubr.f32.mxu1 %v69_v17  ;;  %v830_v24 = vpack.c.bf16 %v87_v12, %v86_v11 }
  0x4a   :  { %v119_v19 = vld [vmem:[#allocation6 + $0x168] sm:$0xff]  ;;  %266 = vmatprep.mubr.f32.mxu0 %v67_v16  ;;  %v136_v22 = vld [vmem:[#allocation6 + $0x1f0] sm:$0xff]  ;;  %v137_v23 = vld [vmem:[#allocation6 + $0x1f8] sm:$0xff]  ;;  %v832_v26 = vpack.c.bf16 %v105_v21, %v104_v20 }
  0x4b   :  { %823 = vmatpush3.bf16.msra.mxu0 %v822_v62  ;;  %v862_v25 = vpack.c.bf16 %v119_v19, %v118_v15  ;;  %v88_v27 = vld [vmem:[#allocation6 + $0x70] sm:$0xff]  ;;  %v89_v28 = vld [vmem:[#allocation6 + $0x78] sm:$0xff]  ;;  %v864_v30 = vpack.c.bf16 %v137_v23, %v136_v22  ;;  %v154_v32 = vld [vmem:[#allocation6 + $0x280] sm:$0xff] }
  0x4c   :  { %855 = vmatpush3.bf16.msra.mxu1 %v854_v63  ;;  %825 = vmatprep.subr.bf16.mxu0 %v824_v0  ;;  %v120_v29 = vld [vmem:[#allocation6 + $0x170] sm:$0xff]  ;;  %v121_v31 = vld [vmem:[#allocation6 + $0x178] sm:$0xff]  ;;  %v155_v33 = vld [vmem:[#allocation6 + $0x288] sm:$0xff]  ;;  %v834_v36 = vpack.c.bf16 %v89_v28, %v88_v27 }
  0x4d   :  { %857 = vmatprep.subr.bf16.mxu1 %v856_v4  ;;  %v186_v34 = vld [vmem:[#allocation6 + $0x380] sm:$0xff]  ;;  %v187_v35 = vld [vmem:[#allocation6 + $0x388] sm:$0xff]  ;;  %v866_v37 = vpack.c.bf16 %v121_v31, %v120_v29  ;;  %v868_v38 = vpack.c.bf16 %v155_v33, %v154_v32  ;;  %v156_v44 = vld [vmem:[#allocation6 + $0x290] sm:$0xff] }
  0x4e   :  { %v138_v39 = vld [vmem:[#allocation6 + $0x200] sm:$0xff]  ;;  %v139_v40 = vld [vmem:[#allocation6 + $0x208] sm:$0xff]  ;;  %v900_v42 = vpack.c.bf16 %v187_v35, %v186_v34  ;;  %v157_v45 = vld [vmem:[#allocation6 + $0x298] sm:$0xff] }
  0x4f   :  { %827 = vmatpush3.bf16.msra.mxu0 %v826_v10  ;;  %v170_v41 = vld [vmem:[#allocation6 + $0x300] sm:$0xff]  ;;  %v171_v43 = vld [vmem:[#allocation6 + $0x308] sm:$0xff]  ;;  %v188_v46 = vld [vmem:[#allocation6 + $0x390] sm:$0xff]  ;;  %v870_v50 = vpack.c.bf16 %v139_v40, %v138_v39  ;;  %v872_v52 = vpack.c.bf16 %v157_v45, %v156_v44 }
  0x50   :  { %859 = vmatpush3.bf16.msra.mxu1 %v858_v13  ;;  %829 = vmatprep.subr.bf16.mxu0 %v828_v14  ;;  %v189_v47 = vld [vmem:[#allocation6 + $0x398] sm:$0xff]  ;;  %v66_v48 = vld [vmem:[#allocation3] sm:$0xff]  ;;  %v68_v49 = vld [vmem:[#allocation3 + $0x10] sm:$0xff]  ;;  %v902_v51 = vpack.c.bf16 %v171_v43, %v170_v41 }
  0x51   :  { %861 = vmatprep.subr.bf16.mxu1 %v860_v18  ;;  %v140_v53 = vld [vmem:[#allocation6 + $0x210] sm:$0xff]  ;;  %v141_v54 = vld [vmem:[#allocation6 + $0x218] sm:$0xff]  ;;  %v904_v56 = vpack.c.bf16 %v189_v47, %v188_v46  ;;  %v158_v58 = vld [vmem:[#allocation6 + $0x2a0] sm:$0xff] }
  0x52   :  { %v172_v55 = vld [vmem:[#allocation6 + $0x310] sm:$0xff]  ;;  %v173_v57 = vld [vmem:[#allocation6 + $0x318] sm:$0xff]  ;;  %v159_v59 = vld [vmem:[#allocation6 + $0x2a8] sm:$0xff]  ;;  %v874_v62 = vpack.c.bf16 %v141_v54, %v140_v53 }
  0x53   :  { %831 = vmatpush3.bf16.msra.mxu0 %v830_v24  ;;  %v190_v60 = vld [vmem:[#allocation6 + $0x3a0] sm:$0xff]  ;;  %v191_v61 = vld [vmem:[#allocation6 + $0x3a8] sm:$0xff]  ;;  %v906_v63 = vpack.c.bf16 %v173_v57, %v172_v55  ;;  %v876_v0 = vpack.c.bf16 %v159_v59, %v158_v58  ;;  %v160_v6 = vld [vmem:[#allocation6 + $0x2b0] sm:$0xff] }
  0x54   :  { %863 = vmatpush3.bf16.msra.mxu1 %v862_v25  ;;  %833 = vmatprep.subr.bf16.mxu0 %v832_v26  ;;  %v142_v1 = vld [vmem:[#allocation6 + $0x220] sm:$0xff]  ;;  %v143_v2 = vld [vmem:[#allocation6 + $0x228] sm:$0xff]  ;;  %v908_v4 = vpack.c.bf16 %v191_v61, %v190_v60  ;;  %v161_v7 = vld [vmem:[#allocation6 + $0x2b8] sm:$0xff] }
  0x55   :  { %865 = vmatprep.subr.bf16.mxu1 %v864_v30  ;;  %v174_v3 = vld [vmem:[#allocation6 + $0x320] sm:$0xff]  ;;  %v175_v5 = vld [vmem:[#allocation6 + $0x328] sm:$0xff]  ;;  %v192_v8 = vld [vmem:[#allocation6 + $0x3b0] sm:$0xff]  ;;  %v878_v10 = vpack.c.bf16 %v143_v2, %v142_v1  ;;  %v880_v12 = vpack.c.bf16 %v161_v7, %v160_v6 }
  0x56   :  { %v193_v9 = vld [vmem:[#allocation6 + $0x3b8] sm:$0xff]  ;;  %v910_v11 = vpack.c.bf16 %v175_v5, %v174_v3  ;;  %v144_v13 = vld [vmem:[#allocation6 + $0x230] sm:$0xff]  ;;  %v162_v18 = vld [vmem:[#allocation6 + $0x2c0] sm:$0xff] }
  0x57   :  { %835 = vmatpush3.bf16.msra.mxu0 %v834_v36  ;;  %v145_v14 = vld [vmem:[#allocation6 + $0x238] sm:$0xff]  ;;  %v176_v15 = vld [vmem:[#allocation6 + $0x330] sm:$0xff]  ;;  %v912_v16 = vpack.c.bf16 %v193_v9, %v192_v8  ;;  %v163_v19 = vld [vmem:[#allocation6 + $0x2c8] sm:$0xff] }
  0x58   :  { %867 = vmatpush3.bf16.msra.mxu1 %v866_v37  ;;  %869 = vmatprep.subr.bf16.mxu0 %v868_v38  ;;  %v177_v17 = vld [vmem:[#allocation6 + $0x338] sm:$0xff]  ;;  %v194_v20 = vld [vmem:[#allocation6 + $0x3c0] sm:$0xff]  ;;  %v195_v21 = vld [vmem:[#allocation6 + $0x3c8] sm:$0xff]  ;;  %v882_v22 = vpack.c.bf16 %v145_v14, %v144_v13  ;;  %v884_v26 = vpack.c.bf16 %v163_v19, %v162_v18 }
  0x59   :  { %901 = vmatprep.subr.bf16.mxu1 %v900_v42  ;;  %v71_v23 = vld [vmem:[#allocation3 + $0x28] sm:$0xff]  ;;  %v73_v24 = vld [vmem:[#allocation3 + $0x38] sm:$0xff]  ;;  %v914_v25 = vpack.c.bf16 %v177_v17, %v176_v15  ;;  %v146_v27 = vld [vmem:[#allocation6 + $0x240] sm:$0xff]  ;;  %v916_v30 = vpack.c.bf16 %v195_v21, %v194_v20 }
  0x5a   :  { %267 = vmatmul.mubr.f32.vlgmr.msra.gmra.mrb[0].mxu0 %v66_v48  ;;  %v147_v28 = vld [vmem:[#allocation6 + $0x248] sm:$0xff]  ;;  %v178_v29 = vld [vmem:[#allocation6 + $0x340] sm:$0xff]  ;;  %v164_v32 = vld [vmem:[#allocation6 + $0x2d0] sm:$0xff] }
  0x5b   :  { %337 = vmatmul.mubr.f32.vlgmr.msra.gmra.mrb[0].mxu1 %v68_v49  ;;  %871 = vmatpush3.bf16.msra.mxu0 %v870_v50  ;;  %v179_v31 = vld [vmem:[#allocation6 + $0x348] sm:$0xff]  ;;  %v165_v33 = vld [vmem:[#allocation6 + $0x2d8] sm:$0xff]  ;;  %v196_v34 = vld [vmem:[#allocation6 + $0x3d0] sm:$0xff]  ;;  %v886_v36 = vpack.c.bf16 %v147_v28, %v146_v27 }
  0x5c   :  { %903 = vmatpush3.bf16.msra.mxu1 %v902_v51  ;;  %873 = vmatprep.subr.bf16.mxu0 %v872_v52  ;;  %v197_v35 = vld [vmem:[#allocation6 + $0x3d8] sm:$0xff]  ;;  %v918_v37 = vpack.c.bf16 %v179_v31, %v178_v29  ;;  %v888_v38 = vpack.c.bf16 %v165_v33, %v164_v32  ;;  %v148_v39 = vld [vmem:[#allocation6 + $0x250] sm:$0xff]  ;;  %v166_v44 = vld [vmem:[#allocation6 + $0x2e0] sm:$0xff]  ;;  %v1066_v33 = vmov 0.0  }
  0x5d   :  { %905 = vmatprep.subr.bf16.mxu1 %v904_v56  ;;  %406 = vmatprep.mubr.f32.mxu0 %v71_v23  ;;  %v149_v40 = vld [vmem:[#allocation6 + $0x258] sm:$0xff]  ;;  %v180_v41 = vld [vmem:[#allocation6 + $0x350] sm:$0xff]  ;;  %v920_v42 = vpack.c.bf16 %v197_v35, %v196_v34  ;;  %v167_v45 = vld [vmem:[#allocation6 + $0x2e8] sm:$0xff] }
  0x5e   :  { %476 = vmatprep.mubr.f32.mxu1 %v73_v24  ;;  %v181_v43 = vld [vmem:[#allocation6 + $0x358] sm:$0xff]  ;;  %v198_v46 = vld [vmem:[#allocation6 + $0x3e0] sm:$0xff]  ;;  %v199_v47 = vld [vmem:[#allocation6 + $0x3e8] sm:$0xff]  ;;  %v890_v48 = vpack.c.bf16 %v149_v40, %v148_v39  ;;  %v892_v50 = vpack.c.bf16 %v167_v45, %v166_v44 }
  0x5f   :  { %875 = vmatpush3.bf16.msra.mxu0 %v874_v62  ;;  %v922_v49 = vpack.c.bf16 %v181_v43, %v180_v41  ;;  %v150_v51 = vld [vmem:[#allocation6 + $0x260] sm:$0xff]  ;;  %v151_v52 = vld [vmem:[#allocation6 + $0x268] sm:$0xff]  ;;  %v924_v54 = vpack.c.bf16 %v199_v47, %v198_v46  ;;  %v168_v56 = vld [vmem:[#allocation6 + $0x2f0] sm:$0xff] }
  0x60   :  { %907 = vmatpush3.bf16.msra.mxu1 %v906_v63  ;;  %877 = vmatprep.subr.bf16.mxu0 %v876_v0  ;;  %v182_v53 = vld [vmem:[#allocation6 + $0x360] sm:$0xff]  ;;  %v183_v55 = vld [vmem:[#allocation6 + $0x368] sm:$0xff]  ;;  %v169_v57 = vld [vmem:[#allocation6 + $0x2f8] sm:$0xff]  ;;  %v894_v60 = vpack.c.bf16 %v151_v52, %v150_v51 }
  0x61   :  { %909 = vmatprep.subr.bf16.mxu1 %v908_v4  ;;  %v200_v58 = vld [vmem:[#allocation6 + $0x3f0] sm:$0xff]  ;;  %v201_v59 = vld [vmem:[#allocation6 + $0x3f8] sm:$0xff]  ;;  %v926_v61 = vpack.c.bf16 %v183_v55, %v182_v53  ;;  %v896_v62 = vpack.c.bf16 %v169_v57, %v168_v56  ;;  %v70_v6 = vld [vmem:[#allocation3 + $0x20] sm:$0xff] }
  0x62   :  { %v152_v63 = vld [vmem:[#allocation6 + $0x270] sm:$0xff]  ;;  %v153_v0 = vld [vmem:[#allocation6 + $0x278] sm:$0xff]  ;;  %v928_v1 = vpack.c.bf16 %v201_v59, %v200_v58  ;;  %v499_v8 = vld [vmem:[#allocation8] sm:$0xff] }
  0x63   :  { %879 = vmatpush3.bf16.msra.mxu0 %v878_v10  ;;  %v184_v2 = vld [vmem:[#allocation6 + $0x370] sm:$0xff]  ;;  %v185_v3 = vld [vmem:[#allocation6 + $0x378] sm:$0xff]  ;;  %v898_v4 = vpack.c.bf16 %v153_v0, %v152_v63  ;;  %v500_v9 = vld [vmem:[#allocation8 + $0x8] sm:$0xff] }
  0x64   :  { %911 = vmatpush3.bf16.msra.mxu1 %v910_v11  ;;  %881 = vmatprep.subr.bf16.mxu0 %v880_v12  ;;  %v930_v5 = vpack.c.bf16 %v185_v3, %v184_v2  ;;  %v72_v7 = vld [vmem:[#allocation3 + $0x30] sm:$0xff]  ;;  %v1064_v11 = vmov 0.0|0.0   ;;  %v933_v12 = vpack.c.bf16 %v500_v9, %v499_v8  ;;  %v502_v13 = vld [vmem:[#allocation8 + $0x18] sm:$0xff]  ;;  %v503_v15 = vld [vmem:[#allocation8 + $0x20] sm:$0xff] }
  0x65   :  { %913 = vmatprep.subr.bf16.mxu1 %v912_v16  ;;  %v501_v10 = vld [vmem:[#allocation8 + $0x10] sm:$0xff]  ;;  %v504_v16 = vld [vmem:[#allocation8 + $0x28] sm:$0xff]  ;;  %v506_v19 = vld [vmem:[#allocation8 + $0x38] sm:$0xff] }
  0x66   :  { %v936_v14 = vpack.c.bf16 %v502_v13, %v501_v10  ;;  %v939_v17 = vpack.c.bf16 %v504_v16, %v503_v15  ;;  %v505_v18 = vld [vmem:[#allocation8 + $0x30] sm:$0xff]  ;;  %v507_v21 = vld [vmem:[#allocation8 + $0x40] sm:$0xff]  ;;  %v512_v28 = vld [vmem:[#allocation8 + $0x68] sm:$0xff] }
  0x67   :  { %883 = vmatpush3.bf16.msra.mxu0 %v882_v22  ;;  %v942_v20 = vpack.c.bf16 %v506_v19, %v505_v18  ;;  %v508_v22 = vld [vmem:[#allocation8 + $0x48] sm:$0xff]  ;;  %v509_v24 = vld [vmem:[#allocation8 + $0x50] sm:$0xff]  ;;  %v511_v27 = vld [vmem:[#allocation8 + $0x60] sm:$0xff] }
  0x68   :  { %915 = vmatpush3.bf16.msra.mxu1 %v914_v25  ;;  %885 = vmatprep.subr.bf16.mxu0 %v884_v26  ;;  %v945_v23 = vpack.c.bf16 %v508_v22, %v507_v21  ;;  %v510_v25 = vld [vmem:[#allocation8 + $0x58] sm:$0xff]  ;;  %v951_v29 = vpack.c.bf16 %v512_v28, %v511_v27  ;;  %v611_v52 = vld [vmem:[%s1162_s4] ss:$0 sm:$0xff] }
  0x69   :  { %917 = vmatprep.subr.bf16.mxu1 %v916_v30  ;;  %v948_v26 = vpack.c.bf16 %v510_v25, %v509_v24  ;;  %v513_v30 = vld [vmem:[#allocation8 + $0x70] sm:$0xff]  ;;  %v514_v31 = vld [vmem:[#allocation8 + $0x78] sm:$0xff] }
  0x6a   :  { %v954_v32 = vpack.c.bf16 %v514_v31, %v513_v30 }
  0x6b   :  { %887 = vmatpush3.bf16.msra.mxu0 %v886_v36 }
  0x6c   :  { %919 = vmatpush3.bf16.msra.mxu1 %v918_v37  ;;  %889 = vmatprep.subr.bf16.mxu0 %v888_v38 }
  0x6d   :  { %921 = vmatprep.subr.bf16.mxu1 %v920_v42 }
  0x6f   :  { %891 = vmatpush3.bf16.msra.mxu0 %v890_v48  ;;  %v610_v48 = vld [vmem:[%s1160_s2] ss:$0 sm:$0xff] }
  0x70   :  { %923 = vmatpush3.bf16.msra.mxu1 %v922_v49  ;;  %893 = vmatprep.subr.bf16.mxu0 %v892_v50 }
  0x71   :  { %925 = vmatprep.subr.bf16.mxu1 %v924_v54 }
  0x73   :  { %895 = vmatpush3.bf16.msra.mxu0 %v894_v60 }
  0x74   :  { %927 = vmatpush3.bf16.msra.mxu1 %v926_v61  ;;  %897 = vmatprep.subr.bf16.mxu0 %v896_v62 }
  0x75   :  { %929 = vmatprep.subr.bf16.mxu1 %v928_v1 }
  0x77   :  { %899 = vmatpush3.bf16.msra.mxu0 %v898_v4 }
  0x78   :  { %931 = vmatpush3.bf16.msra.mxu1 %v930_v5  ;;  %932 = vmatprep.subr.bf16.mxu0 %v1064_v11 }
  0x7a   :  { %407 = vmatmul.mubr.f32.vlgmr.msra.gmra.mrb[2].mxu0 %v70_v6 }
  0x7b   :  { %477 = vmatmul.mubr.f32.vlgmr.msra.gmra.mrb[2].mxu1 %v72_v7  ;;  %934 = vmatpush3.bf16.msra.mxu0 %v933_v12 }
  0x7c   :  { %935 = vmatprep.subr.bf16.mxu0 %v1064_v11  ;;  %801 = vmatprep.mubr.msk.f32.mxu0 %vm1065_vm0, %v1066_v33 }
  0x7f   :  { %937 = vmatpush3.bf16.msra.mxu0 %v936_v14 }
  0x80   :  { %938 = vmatprep.subr.bf16.mxu0 %v1064_v11 }
  0x83   :  { %940 = vmatpush3.bf16.msra.mxu0 %v939_v17 }
  0x84   :  { %941 = vmatprep.subr.bf16.mxu0 %v1064_v11 }
  0x87   :  { %943 = vmatpush3.bf16.msra.mxu0 %v942_v20 }
  0x88   :  { %944 = vmatprep.subr.bf16.mxu0 %v1064_v11 }
  0x8b   :  { %946 = vmatpush3.bf16.msra.mxu0 %v945_v23 }
  0x8c   :  { %947 = vmatprep.subr.bf16.mxu0 %v1064_v11 }
  0x8f   :  { %949 = vmatpush3.bf16.msra.mxu0 %v948_v26 }
  0x90   :  { %950 = vmatprep.subr.bf16.mxu0 %v1064_v11 }
  0x93   :  { %952 = vmatpush3.bf16.msra.mxu0 %v951_v29 }
  0x94   :  { %953 = vmatprep.subr.bf16.mxu0 %v1064_v11 }
  0x97   :  { %955 = vmatpush3.bf16.msra.mxu0 %v954_v32 }
 0x12d   :  { %v644_v34 = vpop.f32.mrb[0].mxu0 }
 0x12e   :  { %v679_v35 = vpop.f32.mrb[0].mxu1  ;;  %v645_v36 = vpop.f32.mrb[1].mxu0 }
 0x12f   :  { %v646_v37 = vadd.f32 %v645_v36, %v644_v34  ;;  %v680_v38 = vpop.f32.mrb[1].mxu1 }
 0x130   :  { %v681_v39 = vadd.f32 %v680_v38, %v679_v35 }
 0x132   :  { %v339_v40 = vadd.f32 %v681_v39, %v646_v37 }
 0x14d   :  { %v714_v41 = vpop.f32.mrb[2].mxu0 }
 0x14e   :  { %v715_v42 = vpop.f32.mrb[3].mxu0  ;;  %v749_v43 = vpop.f32.mrb[2].mxu1 }
 0x14f   :  { %v716_v44 = vadd.f32 %v715_v42, %v714_v41  ;;  %v750_v45 = vpop.f32.mrb[3].mxu1 }
 0x150   :  { %v751_v46 = vadd.f32 %v750_v45, %v749_v43 }
 0x151   :  { %v409_v47 = vadd.f32 %v716_v44, %v339_v40 }
 0x153   :  { %v479_v49 = vadd.f32 %v751_v46, %v409_v47 }
 0x155   :  { %v495_v50 = vadd.f32 %v610_v48, %v479_v49 }
 0x157   :  { %v496_v51 = vmax.f32 %v495_v50, 0.0 }
 0x159   :  { %802 = vmatmul.mubr.f32.vlgmr.msra.gmra.mrb[4].mxu0 %v496_v51 }
 0x22c   :  { %v588_v53 = vpop.f32.mrb[4].mxu0 }
 0x22d   :  { %v589_v54 = vadd.f32 %v611_v52, %v588_v53  ;;  %v803_v55 = vpop.f32.mrb[5].mxu0 }
 0x22f   :  { %v592_v56 = vmax.f32 %v589_v54, 0.0 }
 0x231   :  { %593 = vst [vmem:[#allocation9] sm:$0xff] %v592_v56 }
 0x232   :  { %1042 = shalt.err (!%p1039_p0)
}
 0x233   :  { %s1043_s11 = scalar_lea.hbm %s1163_s5, 128 }
 0x234   :  { %p1044_p1 = scmp.ne.s32.totalorder %s1163_s5, %s1043_s11  ;;  %p1047_p2 = scmp.lt.u32.totalorder %s1043_s11, %s1163_s5 }
 0x236   :  { %p1049_p3 = pnand %p1047_p2, %p1044_p1 }
 0x238   :  { %1052 = shalt.err (!%p1049_p3)
}
 0x239   :  { %603 = dma.vmem_to_hbm [thread:$0]  %s601_s8, 128, %s1163_s5, [#allocation5]  }
 0x23a   :  { %1057 = dma.done.wait [#allocation5], 128  }
 0x23b   :  { %1058 = vsyncadd [#allocation5], 4294967168 }
 0x23c   :  { %607 = vsyncpa [#allocation4], 1 }
 0x23d   :  { %608 = vsyncpa [#allocation7], 1 }
 0x23e   :  { %609 = vsyncpa [#allocation5], 1 }

</bundles_post_ra>
